<compile_context>
chip_gen: v6e
topology: v6e:2x2x1
jax: 0.10.0
libtpu: 0.0.40
codegen_flags: <defaults>
</compile_context>

<pallas_src>
import functools

import jax
import jax.numpy as jnp
from jax.experimental import pallas as pl
from jax.experimental.pallas import tpu as pltpu

EPS = 1e-5  # PyTorch InstanceNorm1d default eps (affine=False)


def _spadain_resblock_kernel(
    x_ref,      # (nb, P,   L)  activation block (nb samples)
    a_ref,      # (nb, Cin, L)  addition block (same samples)
    modw_ref,   # (6P, Cin)     fused SPAdaIN modulation conv weights
    modb_ref,   # (6P, 1)       fused SPAdaIN modulation conv biases
    cw_ref,     # (3P, P)       stacked conv1 / conv2 / conv_res weights
    cb_ref,     # (3P, 1)       stacked conv1 / conv2 / conv_res biases
    out_ref,    # (nb, P,   L)
    *, nb, planes, length,
):
    P = planes
    L = length
    f32 = jnp.float32

    # Hoist parameter loads and bias lane-broadcasts out of the sample loop.
    modw = modw_ref[...].astype(f32)                                  # (6P, Cin)
    modb = jnp.broadcast_to(modb_ref[...], (6 * P, L)).astype(f32)    # (6P, L)
    cw = cw_ref[...].astype(f32)                                      # (3P, P)
    cb = jnp.broadcast_to(cb_ref[...], (3 * P, L)).astype(f32)        # (3P, L)

    def inorm(z):
        # InstanceNorm1d (affine=False, biased variance) on a (P, L) tile:
        # lane reductions go to the XLU, rsqrt to the EUP.
        mu = jnp.mean(z, axis=-1, keepdims=True)
        d = z - mu
        var = jnp.mean(d * d, axis=-1, keepdims=True)
        return d * jax.lax.rsqrt(var + EPS)

    def conv(idx, z):
        # One of the three packed (P, P) 1x1 convs on a (P, L) tile.
        w = cw[idx * P:(idx + 1) * P, :]
        b = cb[idx * P:(idx + 1) * P, :]
        return jnp.dot(w, z, preferred_element_type=f32) + b

    for s in range(nb):
        x = x_ref[s].astype(f32)       # (P,   L) channel-major tile
        a = a_ref[s].astype(f32)       # (Cin, L)

        # All six SPAdaIN modulation convs on `addition` in one matmul.
        mod = jnp.dot(modw, a, preferred_element_type=f32) + modb     # (6P, L)
        w1, b1 = mod[0 * P:1 * P], mod[1 * P:2 * P]
        w2, b2 = mod[2 * P:3 * P], mod[3 * P:4 * P]
        wr, br = mod[4 * P:5 * P], mod[5 * P:6 * P]

        # Shared instance norm of x (used by spadain1 AND spadain_res).
        xn = inorm(x)

        # Main branch.
        h = jnp.maximum(w1 * xn + b1, 0.0)
        h = conv(0, h)                                   # conv1
        h = jnp.maximum(w2 * inorm(h) + b2, 0.0)
        h = conv(1, h)                                   # conv2

        # Residual branch.
        r = jnp.maximum(wr * xn + br, 0.0)
        r = conv(2, r)                                   # conv_res

        out_ref[s] = (h + r).astype(out_ref.dtype)


def _pick_nb(n, per_sample_bytes, budget_bytes=6 << 20):
    """Largest divisor nb of n whose per-step working set fits the budget,
    preferring a grid of >= 2 steps so both TensorCores (v7x) get work."""
    divs = [d for d in range(1, n + 1)
            if n % d == 0 and d * per_sample_bytes <= budget_bytes]
    if not divs:
        return 1
    multi = [d for d in divs if n // d >= 2]
    return max(multi) if multi else max(divs)


def spadain_resblock(x, addition, params, *, nb=None):
    """x: (N, planes, L), addition: (N, input_nc, L) -> (N, planes, L)."""
    N, P, L = x.shape
    _, Cin, _ = addition.shape

    if nb is None:
        per_sample_bytes = 4 * L * (16 * P + 2 * Cin)   # rough f32 working set
        nb = _pick_nb(N, per_sample_bytes)
    assert N % nb == 0
    grid = (N // nb,)

    # Pack parameters (order must match the kernel's static slices).
    mod_w = jnp.concatenate(
        [params["s1ww"], params["s1bw"], params["s2ww"],
         params["s2bw"], params["srww"], params["srbw"]], axis=0)   # (6P, Cin)
    mod_b = jnp.concatenate(
        [params["s1wb"], params["s1bb"], params["s2wb"],
         params["s2bb"], params["srwb"], params["srbb"]], axis=0)   # (6P, 1)
    conv_w = jnp.concatenate(
        [params["c1w"], params["c2w"], params["crw"]], axis=0)      # (3P, P)
    conv_b = jnp.concatenate(
        [params["c1b"], params["c2b"], params["crb"]], axis=0)      # (3P, 1)

    kernel = functools.partial(_spadain_resblock_kernel,
                               nb=nb, planes=P, length=L)

    def full_spec(arr):
        return pl.BlockSpec(arr.shape, lambda i: (0, 0))

    # Advisory cost estimate for XLA's scheduler.
    flops = N * L * (2 * 6 * P * Cin + 3 * 2 * P * P + 24 * P)
    bytes_accessed = (x.dtype.itemsize * (2 * N * P * L + N * Cin * L)
                      + 4 * (6 * P * Cin + 6 * P + 3 * P * P + 3 * P))
    cost = pl.CostEstimate(flops=flops, transcendentals=2 * N * P,
                           bytes_accessed=bytes_accessed)

    # Explicit VMEM budget: double-buffered I/O blocks + params + live temps,
    # with 2x headroom, capped at 32 MiB (safe on v7x's 64 MiB VMEM).
    blk_bytes = 2 * nb * L * (2 * P + Cin) * x.dtype.itemsize
    param_bytes = 2 * 4 * (6 * P * Cin + 6 * P + 3 * P * P + 3 * P)
    temp_bytes = 4 * nb * L * (12 * P + 2 * Cin)
    vmem_limit = int(min(32 * 1024 * 1024,
                         max(4 * 1024 * 1024,
                             2 * (blk_bytes + param_bytes + temp_bytes))))

    return pl.pallas_call(
        kernel,
        out_shape=jax.ShapeDtypeStruct((N, P, L), x.dtype),
        grid_spec=pltpu.PrefetchScalarGridSpec(
            num_scalar_prefetch=0,
            grid=grid,
            in_specs=[
                pl.BlockSpec((nb, P, L), lambda i: (i, 0, 0)),    # x
                pl.BlockSpec((nb, Cin, L), lambda i: (i, 0, 0)),  # addition
                full_spec(mod_w), full_spec(mod_b),
                full_spec(conv_w), full_spec(conv_b),
            ],
            out_specs=pl.BlockSpec((nb, P, L), lambda i: (i, 0, 0)),
        ),
        compiler_params=pltpu.CompilerParams(
            dimension_semantics=("parallel",),
            vmem_limit_bytes=vmem_limit,
        ),
        cost_estimate=cost,
    )(x, addition, mod_w, mod_b, conv_w, conv_b)


# ---------------------------------------------------------------------------
# Deterministic parameter init (PyTorch Conv1d-style U(-1/sqrt(fan_in), ...))
# ---------------------------------------------------------------------------
def init_params(key, input_nc, planes):
    names_fanin = [
        ("s1w", input_nc), ("s1b", input_nc),   # spadain1 conv_weight / conv_bias
        ("s2w", input_nc), ("s2b", input_nc),   # spadain2
        ("srw", input_nc), ("srb", input_nc),   # spadain_res
        ("c1", planes), ("c2", planes), ("cr", planes),  # conv1 / conv2 / conv_res
    ]
    params = {}
    keys = jax.random.split(key, len(names_fanin))
    for (name, c_in), k in zip(names_fanin, keys):
        kw, kb = jax.random.split(k)
        bound = 1.0 / float(c_in) ** 0.5
        params[name + "w"] = jax.random.uniform(
            kw, (planes, c_in), jnp.float32, -bound, bound)
        params[name + "b"] = jax.random.uniform(
            kb, (planes, 1), jnp.float32, -bound, bound)
    return params


# ---------------------------------------------------------------------------
# Pure-JAX reference (mirrors the PyTorch forward) for correctness check
# ---------------------------------------------------------------------------
def reference(x, addition, p):
    def inorm(z):
        mu = jnp.mean(z, axis=-1, keepdims=True)
        var = jnp.mean((z - mu) ** 2, axis=-1, keepdims=True)
        return (z - mu) / jnp.sqrt(var + EPS)

    def conv1x1(w, b, z):  # z: (N, C_in, L)
        return jnp.einsum("oc,ncl->nol", w, z) + b[None, :, :]

    def spadain(ww, wb, bw, bb, z):
        zn = inorm(z)
        w = conv1x1(ww, wb, addition)
        b = conv1x1(bw, bb, addition)
        return w * zn + b

    out = spadain(p["s1ww"], p["s1wb"], p["s1bw"], p["s1bb"], x)
    out = jax.nn.relu(out)
    out = conv1x1(p["c1w"], p["c1b"], out)
    out = spadain(p["s2ww"], p["s2wb"], p["s2bw"], p["s2bb"], out)
    out = jax.nn.relu(out)
    out = conv1x1(p["c2w"], p["c2b"], out)
    res = spadain(p["srww"], p["srwb"], p["srbw"], p["srbb"], x)
    res = jax.nn.relu(res)
    res = conv1x1(p["crw"], p["crb"], res)
    return out + res


if __name__ == "__main__":
    N, input_nc, planes, L = 4, 4, 8, 256

    key = jax.random.PRNGKey(0)
    kx, ka, kp = jax.random.split(key, 3)
    x = jax.random.normal(kx, (N, planes, L), jnp.float32)
    addition = jax.random.normal(ka, (N, input_nc, L), jnp.float32)
    params = init_params(kp, input_nc, planes)

    out = spadain_resblock(x, addition, params)
    out = jax.block_until_ready(out)

    ref = reference(x, addition, params)
    assert out.shape == (N, planes, L)
    err = float(jnp.max(jnp.abs(out - ref)))
    assert jnp.allclose(out, ref, atol=1e-4, rtol=1e-4), err
    print("KERNEL_OK")
</pallas_src>

<mosaic_0001>
module attributes {stable_mosaic.version = 11 : i64} {
  func.func @_spadain_resblock_kernel(%arg0: i32, %arg1: memref<2x8x256xf32, #tpu.memory_space<vmem>>, %arg2: memref<2x4x256xf32, #tpu.memory_space<vmem>>, %arg3: memref<48x4xf32, #tpu.memory_space<vmem>>, %arg4: memref<48x1xf32, #tpu.memory_space<vmem>>, %arg5: memref<24x8xf32, #tpu.memory_space<vmem>>, %arg6: memref<24x1xf32, #tpu.memory_space<vmem>>, %arg7: memref<2x8x256xf32, #tpu.memory_space<vmem>>) attributes {dimension_semantics = [#tpu.dimension_semantics<parallel>], iteration_bounds = array<i64: 2>, scalar_prefetch = 0 : i64, scratch_operands = 0 : i64, tpu.core_type = #tpu.core_type<tc>, window_params = [{transform_indices = @transform_0, window_bounds = array<i64: 2, 8, 256>}, {transform_indices = @transform_1, window_bounds = array<i64: 2, 4, 256>}, {pipeline_mode = #tpu.pipeline_mode<synchronous>, transform_indices = @transform_2, window_bounds = array<i64: 48, 4>}, {pipeline_mode = #tpu.pipeline_mode<synchronous>, transform_indices = @transform_3, window_bounds = array<i64: 48, 1>}, {pipeline_mode = #tpu.pipeline_mode<synchronous>, transform_indices = @transform_4, window_bounds = array<i64: 24, 8>}, {pipeline_mode = #tpu.pipeline_mode<synchronous>, transform_indices = @transform_5, window_bounds = array<i64: 24, 1>}, {transform_indices = @transform_6, window_bounds = array<i64: 2, 8, 256>}]} {
    %c0 = arith.constant 0 : index
    %c0_0 = arith.constant 0 : index
    %0 = vector.load %arg3[%c0, %c0_0] : memref<48x4xf32, #tpu.memory_space<vmem>>, vector<48x4xf32>
    %c0_1 = arith.constant 0 : index
    %c0_2 = arith.constant 0 : index
    %1 = vector.load %arg4[%c0_1, %c0_2] : memref<48x1xf32, #tpu.memory_space<vmem>>, vector<48x1xf32>
    %2 = vector.shape_cast %1 : vector<48x1xf32> to vector<48x1xf32>
    %3 = vector.broadcast %2 : vector<48x1xf32> to vector<48x256xf32>
    %c0_3 = arith.constant 0 : index
    %c0_4 = arith.constant 0 : index
    %4 = vector.load %arg5[%c0_3, %c0_4] : memref<24x8xf32, #tpu.memory_space<vmem>>, vector<24x8xf32>
    %c0_5 = arith.constant 0 : index
    %c0_6 = arith.constant 0 : index
    %5 = vector.load %arg6[%c0_5, %c0_6] : memref<24x1xf32, #tpu.memory_space<vmem>>, vector<24x1xf32>
    %6 = vector.shape_cast %5 : vector<24x1xf32> to vector<24x1xf32>
    %7 = vector.broadcast %6 : vector<24x1xf32> to vector<24x256xf32>
    %c0_7 = arith.constant 0 : index
    %c0_8 = arith.constant 0 : index
    %c0_9 = arith.constant 0 : index
    %8 = vector.load %arg1[%c0_7, %c0_8, %c0_9] : memref<2x8x256xf32, #tpu.memory_space<vmem>>, vector<1x8x256xf32>
    %9 = vector.shape_cast %8 : vector<1x8x256xf32> to vector<8x256xf32>
    %c0_10 = arith.constant 0 : index
    %c0_11 = arith.constant 0 : index
    %c0_12 = arith.constant 0 : index
    %10 = vector.load %arg2[%c0_10, %c0_11, %c0_12] : memref<2x4x256xf32, #tpu.memory_space<vmem>>, vector<1x4x256xf32>
    %11 = vector.shape_cast %10 : vector<1x4x256xf32> to vector<4x256xf32>
    %cst = arith.constant dense<0.000000e+00> : vector<48x256xf32>
    %12 = tpu.matmul %0, %11, %cst {dimension_numbers = #tpu.dot_dimension_numbers<[1], [0], [0], [1], [0, 0, 1, 1], [], []>} : vector<48x4xf32>, vector<4x256xf32>, vector<48x256xf32> -> vector<48x256xf32>
    %13 = arith.addf %12, %3 : vector<48x256xf32>
    %14 = vector.extract_strided_slice %13 {offsets = [0, 0], sizes = [8, 256], strides = [1, 1]} : vector<48x256xf32> to vector<8x256xf32>
    %15 = vector.extract_strided_slice %13 {offsets = [8, 0], sizes = [8, 256], strides = [1, 1]} : vector<48x256xf32> to vector<8x256xf32>
    %16 = vector.extract_strided_slice %13 {offsets = [16, 0], sizes = [8, 256], strides = [1, 1]} : vector<48x256xf32> to vector<8x256xf32>
    %17 = vector.extract_strided_slice %13 {offsets = [24, 0], sizes = [8, 256], strides = [1, 1]} : vector<48x256xf32> to vector<8x256xf32>
    %18 = vector.extract_strided_slice %13 {offsets = [32, 0], sizes = [8, 256], strides = [1, 1]} : vector<48x256xf32> to vector<8x256xf32>
    %19 = vector.extract_strided_slice %13 {offsets = [40, 0], sizes = [8, 256], strides = [1, 1]} : vector<48x256xf32> to vector<8x256xf32>
    %cst_13 = arith.constant dense<0.000000e+00> : vector<8xf32>
    %20 = vector.multi_reduction <add>, %9, %cst_13 [1] : vector<8x256xf32> to vector<8xf32>
    %21 = vector.shape_cast %20 : vector<8xf32> to vector<8x1xf32>
    %cst_14 = arith.constant 2.560000e+02 : f32
    %22 = vector.broadcast %cst_14 : f32 to vector<8x1xf32>
    %23 = arith.divf %21, %22 : vector<8x1xf32>
    %24 = vector.broadcast %23 : vector<8x1xf32> to vector<8x256xf32>
    %25 = arith.subf %9, %24 : vector<8x256xf32>
    %26 = arith.mulf %25, %25 : vector<8x256xf32>
    %cst_15 = arith.constant dense<0.000000e+00> : vector<8xf32>
    %27 = vector.multi_reduction <add>, %26, %cst_15 [1] : vector<8x256xf32> to vector<8xf32>
    %28 = vector.shape_cast %27 : vector<8xf32> to vector<8x1xf32>
    %cst_16 = arith.constant 2.560000e+02 : f32
    %29 = vector.broadcast %cst_16 : f32 to vector<8x1xf32>
    %30 = arith.divf %28, %29 : vector<8x1xf32>
    %cst_17 = arith.constant 9.99999974E-6 : f32
    %31 = vector.broadcast %cst_17 : f32 to vector<8x1xf32>
    %32 = arith.addf %30, %31 : vector<8x1xf32>
    %33 = math.rsqrt %32 : vector<8x1xf32>
    %34 = vector.broadcast %33 : vector<8x1xf32> to vector<8x256xf32>
    %35 = arith.mulf %25, %34 : vector<8x256xf32>
    %36 = arith.mulf %14, %35 : vector<8x256xf32>
    %37 = arith.addf %36, %15 : vector<8x256xf32>
    %cst_18 = arith.constant 0.000000e+00 : f32
    %38 = vector.broadcast %cst_18 : f32 to vector<8x256xf32>
    %39 = arith.maximumf %37, %38 : vector<8x256xf32>
    %40 = vector.extract_strided_slice %4 {offsets = [0, 0], sizes = [8, 8], strides = [1, 1]} : vector<24x8xf32> to vector<8x8xf32>
    %41 = vector.extract_strided_slice %7 {offsets = [0, 0], sizes = [8, 256], strides = [1, 1]} : vector<24x256xf32> to vector<8x256xf32>
    %cst_19 = arith.constant dense<0.000000e+00> : vector<8x256xf32>
    %42 = tpu.matmul %40, %39, %cst_19 {dimension_numbers = #tpu.dot_dimension_numbers<[1], [0], [0], [1], [0, 0, 1, 1], [], []>} : vector<8x8xf32>, vector<8x256xf32>, vector<8x256xf32> -> vector<8x256xf32>
    %43 = arith.addf %42, %41 : vector<8x256xf32>
    %cst_20 = arith.constant dense<0.000000e+00> : vector<8xf32>
    %44 = vector.multi_reduction <add>, %43, %cst_20 [1] : vector<8x256xf32> to vector<8xf32>
    %45 = vector.shape_cast %44 : vector<8xf32> to vector<8x1xf32>
    %cst_21 = arith.constant 2.560000e+02 : f32
    %46 = vector.broadcast %cst_21 : f32 to vector<8x1xf32>
    %47 = arith.divf %45, %46 : vector<8x1xf32>
    %48 = vector.broadcast %47 : vector<8x1xf32> to vector<8x256xf32>
    %49 = arith.subf %43, %48 : vector<8x256xf32>
    %50 = arith.mulf %49, %49 : vector<8x256xf32>
    %cst_22 = arith.constant dense<0.000000e+00> : vector<8xf32>
    %51 = vector.multi_reduction <add>, %50, %cst_22 [1] : vector<8x256xf32> to vector<8xf32>
    %52 = vector.shape_cast %51 : vector<8xf32> to vector<8x1xf32>
    %cst_23 = arith.constant 2.560000e+02 : f32
    %53 = vector.broadcast %cst_23 : f32 to vector<8x1xf32>
    %54 = arith.divf %52, %53 : vector<8x1xf32>
    %cst_24 = arith.constant 9.99999974E-6 : f32
    %55 = vector.broadcast %cst_24 : f32 to vector<8x1xf32>
    %56 = arith.addf %54, %55 : vector<8x1xf32>
    %57 = math.rsqrt %56 : vector<8x1xf32>
    %58 = vector.broadcast %57 : vector<8x1xf32> to vector<8x256xf32>
    %59 = arith.mulf %49, %58 : vector<8x256xf32>
    %60 = arith.mulf %16, %59 : vector<8x256xf32>
    %61 = arith.addf %60, %17 : vector<8x256xf32>
    %cst_25 = arith.constant 0.000000e+00 : f32
    %62 = vector.broadcast %cst_25 : f32 to vector<8x256xf32>
    %63 = arith.maximumf %61, %62 : vector<8x256xf32>
    %64 = vector.extract_strided_slice %4 {offsets = [8, 0], sizes = [8, 8], strides = [1, 1]} : vector<24x8xf32> to vector<8x8xf32>
    %65 = vector.extract_strided_slice %7 {offsets = [8, 0], sizes = [8, 256], strides = [1, 1]} : vector<24x256xf32> to vector<8x256xf32>
    %cst_26 = arith.constant dense<0.000000e+00> : vector<8x256xf32>
    %66 = tpu.matmul %64, %63, %cst_26 {dimension_numbers = #tpu.dot_dimension_numbers<[1], [0], [0], [1], [0, 0, 1, 1], [], []>} : vector<8x8xf32>, vector<8x256xf32>, vector<8x256xf32> -> vector<8x256xf32>
    %67 = arith.addf %66, %65 : vector<8x256xf32>
    %68 = arith.mulf %18, %35 : vector<8x256xf32>
    %69 = arith.addf %68, %19 : vector<8x256xf32>
    %cst_27 = arith.constant 0.000000e+00 : f32
    %70 = vector.broadcast %cst_27 : f32 to vector<8x256xf32>
    %71 = arith.maximumf %69, %70 : vector<8x256xf32>
    %72 = vector.extract_strided_slice %4 {offsets = [16, 0], sizes = [8, 8], strides = [1, 1]} : vector<24x8xf32> to vector<8x8xf32>
    %73 = vector.extract_strided_slice %7 {offsets = [16, 0], sizes = [8, 256], strides = [1, 1]} : vector<24x256xf32> to vector<8x256xf32>
    %cst_28 = arith.constant dense<0.000000e+00> : vector<8x256xf32>
    %74 = tpu.matmul %72, %71, %cst_28 {dimension_numbers = #tpu.dot_dimension_numbers<[1], [0], [0], [1], [0, 0, 1, 1], [], []>} : vector<8x8xf32>, vector<8x256xf32>, vector<8x256xf32> -> vector<8x256xf32>
    %75 = arith.addf %74, %73 : vector<8x256xf32>
    %76 = arith.addf %67, %75 : vector<8x256xf32>
    %c0_29 = arith.constant 0 : index
    %c0_30 = arith.constant 0 : index
    %c0_31 = arith.constant 0 : index
    %77 = vector.load %arg7[%c0_29, %c0_30, %c0_31] : memref<2x8x256xf32, #tpu.memory_space<vmem>>, vector<1x8x256xf32>
    %78 = vector.shape_cast %77 : vector<1x8x256xf32> to vector<8x256xf32>
    %79 = vector.shape_cast %76 : vector<8x256xf32> to vector<1x8x256xf32>
    tpu.vector_store %arg7[%c0_29, %c0_30, %c0_31], %79 {strides = array<i32>} : memref<2x8x256xf32, #tpu.memory_space<vmem>>, vector<1x8x256xf32>,
    %c1 = arith.constant 1 : index
    %c0_32 = arith.constant 0 : index
    %c0_33 = arith.constant 0 : index
    %80 = vector.load %arg1[%c1, %c0_32, %c0_33] : memref<2x8x256xf32, #tpu.memory_space<vmem>>, vector<1x8x256xf32>
    %81 = vector.shape_cast %80 : vector<1x8x256xf32> to vector<8x256xf32>
    %c1_34 = arith.constant 1 : index
    %c0_35 = arith.constant 0 : index
    %c0_36 = arith.constant 0 : index
    %82 = vector.load %arg2[%c1_34, %c0_35, %c0_36] : memref<2x4x256xf32, #tpu.memory_space<vmem>>, vector<1x4x256xf32>
    %83 = vector.shape_cast %82 : vector<1x4x256xf32> to vector<4x256xf32>
    %cst_37 = arith.constant dense<0.000000e+00> : vector<48x256xf32>
    %84 = tpu.matmul %0, %83, %cst_37 {dimension_numbers = #tpu.dot_dimension_numbers<[1], [0], [0], [1], [0, 0, 1, 1], [], []>} : vector<48x4xf32>, vector<4x256xf32>, vector<48x256xf32> -> vector<48x256xf32>
    %85 = arith.addf %84, %3 : vector<48x256xf32>
    %86 = vector.extract_strided_slice %85 {offsets = [0, 0], sizes = [8, 256], strides = [1, 1]} : vector<48x256xf32> to vector<8x256xf32>
    %87 = vector.extract_strided_slice %85 {offsets = [8, 0], sizes = [8, 256], strides = [1, 1]} : vector<48x256xf32> to vector<8x256xf32>
    %88 = vector.extract_strided_slice %85 {offsets = [16, 0], sizes = [8, 256], strides = [1, 1]} : vector<48x256xf32> to vector<8x256xf32>
    %89 = vector.extract_strided_slice %85 {offsets = [24, 0], sizes = [8, 256], strides = [1, 1]} : vector<48x256xf32> to vector<8x256xf32>
    %90 = vector.extract_strided_slice %85 {offsets = [32, 0], sizes = [8, 256], strides = [1, 1]} : vector<48x256xf32> to vector<8x256xf32>
    %91 = vector.extract_strided_slice %85 {offsets = [40, 0], sizes = [8, 256], strides = [1, 1]} : vector<48x256xf32> to vector<8x256xf32>
    %cst_38 = arith.constant dense<0.000000e+00> : vector<8xf32>
    %92 = vector.multi_reduction <add>, %81, %cst_38 [1] : vector<8x256xf32> to vector<8xf32>
    %93 = vector.shape_cast %92 : vector<8xf32> to vector<8x1xf32>
    %cst_39 = arith.constant 2.560000e+02 : f32
    %94 = vector.broadcast %cst_39 : f32 to vector<8x1xf32>
    %95 = arith.divf %93, %94 : vector<8x1xf32>
    %96 = vector.broadcast %95 : vector<8x1xf32> to vector<8x256xf32>
    %97 = arith.subf %81, %96 : vector<8x256xf32>
    %98 = arith.mulf %97, %97 : vector<8x256xf32>
    %cst_40 = arith.constant dense<0.000000e+00> : vector<8xf32>
    %99 = vector.multi_reduction <add>, %98, %cst_40 [1] : vector<8x256xf32> to vector<8xf32>
    %100 = vector.shape_cast %99 : vector<8xf32> to vector<8x1xf32>
    %cst_41 = arith.constant 2.560000e+02 : f32
    %101 = vector.broadcast %cst_41 : f32 to vector<8x1xf32>
    %102 = arith.divf %100, %101 : vector<8x1xf32>
    %cst_42 = arith.constant 9.99999974E-6 : f32
    %103 = vector.broadcast %cst_42 : f32 to vector<8x1xf32>
    %104 = arith.addf %102, %103 : vector<8x1xf32>
    %105 = math.rsqrt %104 : vector<8x1xf32>
    %106 = vector.broadcast %105 : vector<8x1xf32> to vector<8x256xf32>
    %107 = arith.mulf %97, %106 : vector<8x256xf32>
    %108 = arith.mulf %86, %107 : vector<8x256xf32>
    %109 = arith.addf %108, %87 : vector<8x256xf32>
    %cst_43 = arith.constant 0.000000e+00 : f32
    %110 = vector.broadcast %cst_43 : f32 to vector<8x256xf32>
    %111 = arith.maximumf %109, %110 : vector<8x256xf32>
    %112 = vector.extract_strided_slice %4 {offsets = [0, 0], sizes = [8, 8], strides = [1, 1]} : vector<24x8xf32> to vector<8x8xf32>
    %113 = vector.extract_strided_slice %7 {offsets = [0, 0], sizes = [8, 256], strides = [1, 1]} : vector<24x256xf32> to vector<8x256xf32>
    %cst_44 = arith.constant dense<0.000000e+00> : vector<8x256xf32>
    %114 = tpu.matmul %112, %111, %cst_44 {dimension_numbers = #tpu.dot_dimension_numbers<[1], [0], [0], [1], [0, 0, 1, 1], [], []>} : vector<8x8xf32>, vector<8x256xf32>, vector<8x256xf32> -> vector<8x256xf32>
    %115 = arith.addf %114, %113 : vector<8x256xf32>
    %cst_45 = arith.constant dense<0.000000e+00> : vector<8xf32>
    %116 = vector.multi_reduction <add>, %115, %cst_45 [1] : vector<8x256xf32> to vector<8xf32>
    %117 = vector.shape_cast %116 : vector<8xf32> to vector<8x1xf32>
    %cst_46 = arith.constant 2.560000e+02 : f32
    %118 = vector.broadcast %cst_46 : f32 to vector<8x1xf32>
    %119 = arith.divf %117, %118 : vector<8x1xf32>
    %120 = vector.broadcast %119 : vector<8x1xf32> to vector<8x256xf32>
    %121 = arith.subf %115, %120 : vector<8x256xf32>
    %122 = arith.mulf %121, %121 : vector<8x256xf32>
    %cst_47 = arith.constant dense<0.000000e+00> : vector<8xf32>
    %123 = vector.multi_reduction <add>, %122, %cst_47 [1] : vector<8x256xf32> to vector<8xf32>
    %124 = vector.shape_cast %123 : vector<8xf32> to vector<8x1xf32>
    %cst_48 = arith.constant 2.560000e+02 : f32
    %125 = vector.broadcast %cst_48 : f32 to vector<8x1xf32>
    %126 = arith.divf %124, %125 : vector<8x1xf32>
    %cst_49 = arith.constant 9.99999974E-6 : f32
    %127 = vector.broadcast %cst_49 : f32 to vector<8x1xf32>
    %128 = arith.addf %126, %127 : vector<8x1xf32>
    %129 = math.rsqrt %128 : vector<8x1xf32>
    %130 = vector.broadcast %129 : vector<8x1xf32> to vector<8x256xf32>
    %131 = arith.mulf %121, %130 : vector<8x256xf32>
    %132 = arith.mulf %88, %131 : vector<8x256xf32>
    %133 = arith.addf %132, %89 : vector<8x256xf32>
    %cst_50 = arith.constant 0.000000e+00 : f32
    %134 = vector.broadcast %cst_50 : f32 to vector<8x256xf32>
    %135 = arith.maximumf %133, %134 : vector<8x256xf32>
    %136 = vector.extract_strided_slice %4 {offsets = [8, 0], sizes = [8, 8], strides = [1, 1]} : vector<24x8xf32> to vector<8x8xf32>
    %137 = vector.extract_strided_slice %7 {offsets = [8, 0], sizes = [8, 256], strides = [1, 1]} : vector<24x256xf32> to vector<8x256xf32>
    %cst_51 = arith.constant dense<0.000000e+00> : vector<8x256xf32>
    %138 = tpu.matmul %136, %135, %cst_51 {dimension_numbers = #tpu.dot_dimension_numbers<[1], [0], [0], [1], [0, 0, 1, 1], [], []>} : vector<8x8xf32>, vector<8x256xf32>, vector<8x256xf32> -> vector<8x256xf32>
    %139 = arith.addf %138, %137 : vector<8x256xf32>
    %140 = arith.mulf %90, %107 : vector<8x256xf32>
    %141 = arith.addf %140, %91 : vector<8x256xf32>
    %cst_52 = arith.constant 0.000000e+00 : f32
    %142 = vector.broadcast %cst_52 : f32 to vector<8x256xf32>
    %143 = arith.maximumf %141, %142 : vector<8x256xf32>
    %144 = vector.extract_strided_slice %4 {offsets = [16, 0], sizes = [8, 8], strides = [1, 1]} : vector<24x8xf32> to vector<8x8xf32>
    %145 = vector.extract_strided_slice %7 {offsets = [16, 0], sizes = [8, 256], strides = [1, 1]} : vector<24x256xf32> to vector<8x256xf32>
    %cst_53 = arith.constant dense<0.000000e+00> : vector<8x256xf32>
    %146 = tpu.matmul %144, %143, %cst_53 {dimension_numbers = #tpu.dot_dimension_numbers<[1], [0], [0], [1], [0, 0, 1, 1], [], []>} : vector<8x8xf32>, vector<8x256xf32>, vector<8x256xf32> -> vector<8x256xf32>
    %147 = arith.addf %146, %145 : vector<8x256xf32>
    %148 = arith.addf %139, %147 : vector<8x256xf32>
    %c1_54 = arith.constant 1 : index
    %c0_55 = arith.constant 0 : index
    %c0_56 = arith.constant 0 : index
    %149 = vector.load %arg7[%c1_54, %c0_55, %c0_56] : memref<2x8x256xf32, #tpu.memory_space<vmem>>, vector<1x8x256xf32>
    %150 = vector.shape_cast %149 : vector<1x8x256xf32> to vector<8x256xf32>
    %151 = vector.shape_cast %148 : vector<8x256xf32> to vector<1x8x256xf32>
    tpu.vector_store %arg7[%c1_54, %c0_55, %c0_56], %151 {strides = array<i32>} : memref<2x8x256xf32, #tpu.memory_space<vmem>>, vector<1x8x256xf32>,
    return
  }
  func.func @transform_0(%arg0: i32) -> (i32, i32, i32) {
    %c0_i32 = arith.constant 0 : i32
    %c0_i32_0 = arith.constant 0 : i32
    %c0_i32_1 = arith.constant 0 : i32
    return %arg0, %c0_i32, %c0_i32_0 : i32, i32, i32
  }
  func.func @transform_1(%arg0: i32) -> (i32, i32, i32) {
    %c0_i32 = arith.constant 0 : i32
    %c0_i32_0 = arith.constant 0 : i32
    %c0_i32_1 = arith.constant 0 : i32
    return %arg0, %c0_i32, %c0_i32_0 : i32, i32, i32
  }
  func.func @transform_2(%arg0: i32) -> (i32, i32) {
    %c0_i32 = arith.constant 0 : i32
    %c0_i32_0 = arith.constant 0 : i32
    %c0_i32_1 = arith.constant 0 : i32
    return %c0_i32, %c0_i32_0 : i32, i32
  }
  func.func @transform_3(%arg0: i32) -> (i32, i32) {
    %c0_i32 = arith.constant 0 : i32
    %c0_i32_0 = arith.constant 0 : i32
    %c0_i32_1 = arith.constant 0 : i32
    return %c0_i32, %c0_i32_0 : i32, i32
  }
  func.func @transform_4(%arg0: i32) -> (i32, i32) {
    %c0_i32 = arith.constant 0 : i32
    %c0_i32_0 = arith.constant 0 : i32
    %c0_i32_1 = arith.constant 0 : i32
    return %c0_i32, %c0_i32_0 : i32, i32
  }
  func.func @transform_5(%arg0: i32) -> (i32, i32) {
    %c0_i32 = arith.constant 0 : i32
    %c0_i32_0 = arith.constant 0 : i32
    %c0_i32_1 = arith.constant 0 : i32
    return %c0_i32, %c0_i32_0 : i32, i32
  }
  func.func @transform_6(%arg0: i32) -> (i32, i32, i32) {
    %c0_i32 = arith.constant 0 : i32
    %c0_i32_0 = arith.constant 0 : i32
    %c0_i32_1 = arith.constant 0 : i32
    return %arg0, %c0_i32, %c0_i32_0 : i32, i32, i32
  }
}

</mosaic_0001>

<bundles_post_ra>
// kernel: tpu_custom_call.1
= control target key start
LH: loop header
LB: loop body
LE: loop exit
PB: predicated region body
PF: predicated region fallthrough
CT: control target
= control target key end

     0   :  { %11 = vsyncpa [#allocation3], 0  ;;  %s1749_s0 = inlined_call_operand.vmem [shape: f32[4,8,256], index: 0, kind: input, shape index: {}]   ;;  %s1750_s1 = inlined_call_operand.vmem [shape: f32[4,4,256], index: 1, kind: input, shape index: {}]   ;;  %s1751_s2 = inlined_call_operand.vmem [shape: f32[48,4], index: 2, kind: input, shape index: {}]   ;;  %s1752_s3 = inlined_call_operand.vmem [shape: f32[48,1], index: 3, kind: input, shape index: {}]   ;;  %s1753_s4 = inlined_call_operand.vmem [shape: f32[24,8], index: 4, kind: input, shape index: {}]   ;;  %s1754_s5 = inlined_call_operand.vmem [shape: f32[24,1], index: 5, kind: input, shape index: {}]   ;;  %s1755_s6 = inlined_call_operand.hbm [shape: f32[4,8,256], index: 6, kind: output, shape index: {}]  }
   0x1   :  { %13 = vsyncpa [#allocation3 + $0x1], 0  ;;  %s1426_s21 = smov 0   ;;  %s1428_s22 = smov 0  }
   0x2   :  { %s1430_s23 = smov 0   ;;  %s1432_s24 = smov 0  }
   0x3 LB: > { %s1447_s25 = sadd.s32 4294967295, %s1384_s24   ;;  %s1221_s26 = sadd.s32 4294967294, %s1384_s24   ;;  %s1384_s24 = sphi %s1432_s24, %s1761_s24   ;;  %s1380_s23 = sphi %s1430_s23, %s1760_s23   ;;  %s1376_s22 = sphi %s1428_s22, %s1759_s22   ;;  %s1372_s21 = sphi %s1426_s21, %s1758_s21  }
   0x4   : > { %s1451_s27 = sadd.s32 1, %s1384_s24   ;;  %s162_s28 = sadd.s32 1, %s1380_s23 }
   0x5   : > { %s159_s29 = ssub.s32 %s1384_s24, %s1451_s27  ;;  %p172_p0 = scmp.ne.s32.totalorder %s1380_s23, %s1376_s22 }
   0x6   : > { %p160_p1 = scmp.eq.s32.totalorder %s159_s29, 0  ;;  %p173_p2 = scmp.eq.s32.totalorder %s1447_s25, 1 }
   0x7   : > { %p178_p3 = scmp.ne.s32.totalorder %s1376_s22, %s1372_s21  ;;  %p179_p4 = scmp.eq.s32.totalorder %s1221_s26, 1 }
   0x8   : > { %s1462_s30 = scalar_select %p160_p1, %s1380_s23, %s162_s28  }
   0x9   : > { %p1464_p5 = por %p173_p2, %p172_p0  ;;  %p1468_p6 = por %p179_p4, %p178_p3 }
   0xa   : > { %p1224_p7 = scmp.ge.s32.totalorder %s1384_s24, 1  ;;  %p229_p8 = scmp.lt.s32.totalorder %s1384_s24, 3 }
   0xc   : > { %p230_p9 = pnand %p1224_p7, %p229_p8 }
   0xd   : > { %s1226_s9 = sshll.u32 (!%p230_p9), %s1447_s25, 1  ;;  %s1268_s15 = sshll.u32 (!%p230_p9), %s1447_s25, 9 }
   0xe   : > { %233 = sbr.rel (%p230_p9) target bundleno = 1791 (0x6ff), region = 44  ;;  %p267_p10 = scmp.lt.s32.totalorder (!%p230_p9), %s1226_s9, 3 }
   0xf   : > { %s1701_s19 = scalar_lea.hbm (!%p230_p9), %s1755_s6, %s1268_s15  ;;  %s1388_s26 = smov (!%p230_p9), [#allocation2]  }
  0x10   : > { %s1328_s28 = sshll.u32 (!%p230_p9), %s1388_s26, 4  ;;  %s1329_s28 = int_to_ptr.vmem [resolvable:$false] %s1328_s28 }
  0x13   : > { %v1386_v0 = vmov 0.0   ;;  %s1763_s9 = smov (!%p267_p10, %s1226_s9), 3  ;;  %vm353_vm0 = vcmask 1043456   ;;  %v1493_v6 = vld [vmem:[%s1751_s2] sm:$0xff]  ;;  %vm334_vm1 = vcmask 31744   ;;  %v1503_v7 = vld [vmem:[%s1751_s2 + $0x8] sm:$0xff] }
  0x14   : > { %422 = vmatprep.mubr.f32.mxu0 %v1386_v0  ;;  %555 = vmatprep.mubr.f32.mxu1 %v1386_v0  ;;  %s1265_s10 = sshll.u32 %s1763_s9, 4  ;;  %s1266_s11 = sshll.u32 %s1763_s9, 3  ;;  %v1511_v8 = vld [vmem:[%s1751_s2 + $0x10] sm:$0xff]  ;;  %v1519_v9 = vld [vmem:[%s1751_s2 + $0x18] sm:$0xff]  ;;  %v1527_v10 = vld [vmem:[%s1751_s2 + $0x20] sm:$0xff]  ;;  %v1387_v12 = vmov 0  }
  0x15   : > { %s1480_s14 = scalar_lea.vmem %s1749_s0, %s1265_s10  ;;  %s1485_s17 = scalar_lea.vmem %s1750_s1, %s1266_s11  ;;  %v1535_v11 = vld [vmem:[%s1751_s2 + $0x28] sm:$0xff]  ;;  %1313 = vset.pattern.permute.xlu0 %v1387_v12  ;;  %1312 = vset.pattern.permute.xlu1 %v1387_v12  ;;  %v287_v13 = vld [vmem:[%s1752_s3] sm:$0xff]  ;;  %v290_v23 = vld [vmem:[%s1752_s3 + $0x18] sm:$0xff]  ;;  %vm487_vm2 = vcmask 64512  }
  0x16   : > { %v329_v1 = vld [vmem:[%s1480_s14] sm:$0xff]  ;;  %v330_v2 = vld [vmem:[%s1480_s14 + $0x8] sm:$0xff]  ;;  %295 = vperm.xlu1 %1312, %v287_v13   ;;  %v1243_v49 = vld [vmem:[%s1480_s14 + $0x10] sm:$0xff]  ;;  %s263_s11 = sand.u32 1, %s1376_s22  }
  0x17   : > { %v331_v3 = vld [vmem:[%s1485_s17] sm:$0xff]  ;;  %v459_v4 = vadd.f32 %v330_v2, %v329_v1  ;;  %v288_v14 = vld [vmem:[%s1752_s3 + $0x8] sm:$0xff]  ;;  %v1244_v50 = vld [vmem:[%s1480_s14 + $0x18] sm:$0xff]  ;;  %s1225_s12 = sshll.u32 %s263_s11, 5  ;;  %s1709_s25 = scalar_lea.sflag [#allocation3], %s263_s11 }
  0x18   : > { %v333_v5 = vcombine.high %v331_v3, %v331_v3  ;;  %v326_v22 = vld [vmem:[%s1754_s5] sm:$0xff]  ;;  %v292_v25 = vld [vmem:[%s1752_s3 + $0x28] sm:$0xff]  ;;  %v864_v51 = vadd.f32 %v1244_v50, %v1243_v49  ;;  %s1677_s13 = scalar_lea.vmem [#allocation2], %s1225_s12 }
  0x19   : > { %460 = vadd.xlane.f32.xlu0 %v459_v4  ;;  %v291_v24 = vld [vmem:[%s1752_s3 + $0x20] sm:$0xff]  ;;  %s1147_s16 = sshll.u32 %s1677_s13, 4  ;;  %s1703_s16 = int_to_ptr.vmem [resolvable:$true] %s1147_s16 }
  0x1a   : > { %1232 = vmatprep.subr.msk.mxu0 %vm353_vm0, %v333_v5  ;;  %300 = vperm.xlu1 %1312, %v288_v14   ;;  %v1575_v48 = vld [vmem:[%s1753_s4] sm:$0xff]  ;;  %s1324_s20 = scalar_lea.vmem %s1703_s16, 512  ;;  %p1331_p0 = scmp.lt.s32.totalorder %s1703_s16, %s1329_s28 }
  0x1b   : > { %1233 = vmatpush1.msk.msra.mxu0 %vm353_vm0, %v331_v3  ;;  %p1325_p11 = scmp.ne.s32.totalorder %s1703_s16, %s1324_s20 }
  0x1c   : > { %1234 = vmatmul.mubr.msk.f32.vlgmr.msra.gmra.mxu0 %vm334_vm1, %v1493_v6 }
  0x1d   : > { %428 = vmatprep.mubr.f32.mxu0 %v1386_v0  ;;  %p1326_p12 = pnand %p1325_p11, %p1464_p5 }
  0x1f   : > { %p1327_p13 = pneg %p1326_p12 }
  0x20   : > { %1235 = vmatmul.mubr.msk.f32.gmra.mxu0 %vm334_vm1, %v1503_v7 }
  0x21   : > { %434 = vmatprep.mubr.f32.mxu0 %v1386_v0 }
  0x24   : > { %1236 = vmatmul.mubr.msk.f32.gmra.mxu0 %vm334_vm1, %v1511_v8 }
  0x25   : > { %440 = vmatprep.mubr.f32.mxu0 %v1386_v0 }
  0x28   : > { %1237 = vmatmul.mubr.msk.f32.gmra.mxu0 %vm334_vm1, %v1519_v9 }
  0x29   : > { %446 = vmatprep.mubr.f32.mxu0 %v1386_v0 }
  0x2c   : > { %1238 = vmatmul.mubr.msk.f32.gmra.mxu0 %vm334_vm1, %v1527_v10 }
  0x2d   : > { %452 = vmatprep.mubr.f32.mxu0 %v1386_v0 }
  0x30   : > { %1239 = vmatmul.mubr.msk.f32.gmra.mxu0 %vm334_vm1, %v1535_v11 }
  0x31   : > { %950 = vmatprep.mubr.f32.mxu0 %v1386_v0 }
  0x91   : > { %v1558_v31 = vpop.permute.xlu1 %295 }
  0x95   : > { %v1560_v34 = vpop.permute.xlu1 %300 }
  0xa2   : > { %v461_v15 = vpop.xlane.xlu0 %460 }
  0xa3   : > { %v463_v16 = vmul.f32 0.00390625, %v461_v15 }
  0xa5   : > { %v464_v17 = vsub.f32 %v329_v1, %v463_v16  ;;  %v465_v18 = vsub.f32 %v330_v2, %v463_v16  ;;  %v289_v2 = vld [vmem:[%s1752_s3 + $0x10] sm:$0xff] }
  0xa7   : > { %v466_v19 = vmul.f32 %v464_v17, %v464_v17  ;;  %v467_v20 = vmul.f32 %v465_v18, %v465_v18 }
  0xa9   : > { %v468_v21 = vadd.f32 %v467_v20, %v466_v19  ;;  %v327_v19 = vld [vmem:[%s1754_s5 + $0x8] sm:$0xff] }
  0xab   : > { %469 = vadd.xlane.f32.xlu0 %v468_v21 }
  0xc1   : > { %484 = vperm.xlu0 %1313, %v326_v22  }
  0xc5   : > { %310 = vperm.xlu0 %1313, %v290_v23  }
  0xc9   : > { %315 = vperm.xlu0 %1313, %v291_v24  }
  0xcd   : > { %320 = vperm.xlu0 %1313, %v292_v25  }
  0xdc   : > { %v424_v29 = vpop.f32.mrf.mxu0 }
  0xdd   : > { %v425_v35 = vadd.f32 %v424_v29, %v1558_v31 }
  0xde   : > { %v426_v30 = vpop.f32.mrf.mxu0 }
  0xdf   : > { %v427_v36 = vadd.f32 %v426_v30, %v1558_v31 }
  0xe0   : > { %v430_v32 = vpop.f32.mrf.mxu0 }
  0xe1   : > { %v431_v42 = vadd.f32 %v430_v32, %v1560_v34 }
  0xe2   : > { %v432_v39 = vpop.f32.mrf.mxu0 }
  0xe3   : > { %v433_v40 = vadd.f32 %v432_v39, %v1560_v34 }
  0xe4   : > { %v436_v20 = vpop.f32.mrf.mxu0 }
  0xe6   : > { %v438_v21 = vpop.f32.mrf.mxu0 }
  0xe8   : > { %v442_v22 = vpop.f32.mrf.mxu0 }
  0xea   : > { %v444_v23 = vpop.f32.mrf.mxu0 }
  0xec   : > { %865 = vadd.xlane.f32.xlu0 %v864_v51 }
 0x134   : > { %v470_v26 = vpop.xlane.xlu0 %469 }
 0x135   : > { %v471_v27 = vmul.f32 0.00390625, %v470_v26  ;;  %v448_v26 = vpop.f32.mrf.mxu0 }
 0x137   : > { %v472_v28 = vadd.f32 1e-05, %v471_v27 }
 0x139   : > { %1316 = vrsqrt.f32 %v472_v28  ;;  %v450_v28 = vpop.f32.mrf.mxu0 }
 0x13b   : > { %v454_v29 = vpop.f32.mrf.mxu0 }
 0x13c   : > { %v1582_v53 = vpop.permute.xlu0 %484 }
 0x13d   : > { %v456_v32 = vpop.f32.mrf.mxu0 }
 0x140   : > { %v1589_v3 = vpop.permute.xlu0 %310 }
 0x144   : > { %v1591_v4 = vpop.permute.xlu0 %315 }
 0x145   : > { %v451_v30 = vadd.f32 %v450_v28, %v1591_v4 }
 0x146   : > { %v1317_v33 = vpop.eup %1316 }
 0x147   : > { %v1564_v37 = vmul.f32 %v1317_v33, %v465_v18  ;;  %v1566_v38 = vmul.f32 %v1317_v33, %v464_v17  ;;  %v449_v33 = vadd.f32 %v448_v26, %v1591_v4 }
 0x148   : > { %v1593_v5 = vpop.permute.xlu0 %320 }
 0x149   : > { %v477_v41 = vmul.f32 %v1564_v37, %v427_v36  ;;  %v476_v43 = vmul.f32 %v1566_v38, %v425_v35  ;;  %v457_v39 = vadd.f32 %v456_v32, %v1593_v5 }
 0x14b   : > { %v479_v44 = vadd.f32 %v477_v41, %v433_v40  ;;  %v478_v45 = vadd.f32 %v476_v43, %v431_v42  ;;  %v664_v40 = vmul.f32 %v1564_v37, %v451_v30  ;;  %v1245_v37 = vld [vmem:[%s1485_s17 + $0x8] sm:$0xff]  ;;  %s1330_s17 = scalar_lea.vmem %s1329_s28, 1024 }
 0x14c   : > { %p1332_p1 = scmp.lt.s32.totalorder %s1330_s17, %s1324_s20 }
 0x14d   : > { %v481_v46 = vmax.f32 %v479_v44, 0.0  ;;  %v480_v47 = vmax.f32 %v478_v45, 0.0  ;;  %v455_v45 = vadd.f32 %v454_v29, %v1593_v5 }
 0x14e   : > { %p1333_p2 = por %p1332_p1, %p1331_p0 }
 0x14f   : > { %521 = vmatprep.subr.mxu1 %v481_v46  ;;  %v663_v46 = vmul.f32 %v1566_v38, %v449_v33 }
 0x150   : > { %522 = vmatpush1.msra.mxu1 %v480_v47  ;;  %v443_v47 = vadd.f32 %v442_v22, %v1589_v3  ;;  %p1334_p3 = pnand %p1333_p2, %p1327_p13 }
 0x151   : > { %1240 = vmatmul.mubr.msk.f32.vlgmr.msra.gmra.mxu1 %vm487_vm2, %v1575_v48 }
 0x152   : > { %656 = vmatprep.mubr.f32.mxu1 %v1386_v0 }
 0x175   : > { %v866_v12 = vpop.xlane.xlu0 %865 }
 0x176   : > { %v867_v13 = vmul.f32 0.00390625, %v866_v12 }
 0x178   : > { %v1595_v14 = vsub.f32 %v1243_v49, %v867_v13  ;;  %v1597_v15 = vsub.f32 %v1244_v50, %v867_v13  ;;  %v445_v49 = vadd.f32 %v444_v23, %v1589_v3 }
 0x17a   : > { %v870_v16 = vmul.f32 %v1595_v14, %v1595_v14  ;;  %v871_v17 = vmul.f32 %v1597_v15, %v1597_v15 }
 0x17c   : > { %v872_v18 = vadd.f32 %v871_v17, %v870_v16 }
 0x211   : > { %v557_v52 = vpop.f32.mrf.mxu1 }
 0x212   : > { %v558_v55 = vadd.f32 %v557_v52, %v1582_v53 }
 0x213   : > { %v559_v54 = vpop.f32.mrf.mxu1 }
 0x214   : > { %v560_v56 = vadd.f32 %v559_v54, %v1582_v53 }
 0x216   : > { %v562_v57 = vadd.f32 %v560_v56, %v558_v55 }
 0x218   : > { %563 = vadd.xlane.f32.xlu1 %v562_v57 }
 0x2a1   : > { %v564_v58 = vpop.xlane.xlu1 %563 }
 0x2a2   : > { %v565_v59 = vmul.f32 0.00390625, %v564_v58 }
 0x2a4   : > { %v566_v60 = vsub.f32 %v558_v55, %v565_v59  ;;  %v567_v61 = vsub.f32 %v560_v56, %v565_v59  ;;  %v666_v55 = vadd.f32 %v664_v40, %v457_v39  ;;  %v665_v56 = vadd.f32 %v663_v46, %v455_v45  ;;  %v1622_v59 = vld [vmem:[%s1753_s4 + $0x8] sm:$0xff] }
 0x2a6   : > { %v568_v62 = vmul.f32 %v566_v60, %v566_v60  ;;  %v569_v63 = vmul.f32 %v567_v61, %v567_v61  ;;  %v668_v38 = vmax.f32 %v666_v55, 0.0 }
 0x2a8   : > { %v570_v1 = vadd.f32 %v569_v63, %v568_v62  ;;  %v1630_v62 = vld [vmem:[%s1753_s4 + $0x10] sm:$0xff] }
 0x2aa   : > { %571 = vadd.xlane.f32.xlu1 %v570_v1 }
 0x2bb   : > { %305 = vperm.xlu1 %1312, %v289_v2  }
 0x2df   : > { %873 = vadd.xlane.f32.xlu1 %v872_v18 }
 0x2f0   : > { %586 = vperm.xlu1 %1312, %v327_v19  }
 0x333   : > { %v572_v24 = vpop.xlane.xlu1 %571 }
 0x334   : > { %v573_v25 = vmul.f32 0.00390625, %v572_v24 }
 0x336   : > { %v574_v27 = vadd.f32 1e-05, %v573_v25 }
 0x337   : > { %v1608_v35 = vpop.permute.xlu1 %305 }
 0x338   : > { %1318 = vrsqrt.f32 %v574_v27  ;;  %v437_v42 = vadd.f32 %v436_v20, %v1608_v35  ;;  %v439_v43 = vadd.f32 %v438_v21, %v1608_v35 }
 0x345   : > { %v1319_v36 = vpop.eup %1318 }
 0x346   : > { %v576_v41 = vmul.f32 %v1319_v36, %v566_v60  ;;  %v577_v44 = vmul.f32 %v1319_v36, %v567_v61  ;;  %v758_v60 = vcombine.high %v1245_v37, %v1245_v37  ;;  %v667_v61 = vmax.f32 %v665_v56, 0.0 }
 0x348   : > { %v578_v50 = vmul.f32 %v576_v41, %v437_v42  ;;  %v579_v51 = vmul.f32 %v577_v44, %v439_v43 }
 0x34a   : > { %v581_v52 = vadd.f32 %v579_v51, %v445_v49  ;;  %v580_v54 = vadd.f32 %v578_v50, %v443_v47 }
 0x34c   : > { %v583_v57 = vmax.f32 %v581_v52, 0.0  ;;  %v582_v58 = vmax.f32 %v580_v54, 0.0 }
 0x34e   : > { %622 = vmatprep.subr.mxu1 %v583_v57 }
 0x34f   : > { %623 = vmatpush1.msra.mxu1 %v582_v58 }
 0x350   : > { %1241 = vmatmul.mubr.msk.f32.vlgmr.msra.gmra.mxu1 %vm487_vm2, %v1622_v59  ;;  %707 = vmatprep.subr.mxu1 %v668_v38 }
 0x351   : > { %708 = vmatpush1.msra.mxu1 %v667_v61  ;;  %741 = vmatprep.mubr.f32.mxu1 %v1386_v0 }
 0x352   : > { %1246 = vmatprep.subr.msk.mxu1 %vm353_vm0, %v758_v60 }
 0x354   : > { %1242 = vmatmul.mubr.msk.f32.vlgmr.msra.gmra.mxu1 %vm487_vm2, %v1630_v62 }
 0x355   : > { %1247 = vmatpush1.msk.msra.mxu1 %vm353_vm0, %v1245_v37  ;;  %827 = vmatprep.mubr.f32.mxu1 %v1386_v0 }
 0x358   : > { %1248 = vmatmul.mubr.msk.f32.vlgmr.msra.gmra.mxu1 %vm334_vm1, %v1493_v6 }
 0x359   : > { %833 = vmatprep.mubr.f32.mxu1 %v1386_v0 }
 0x35c   : > { %1249 = vmatmul.mubr.msk.f32.gmra.mxu1 %vm334_vm1, %v1503_v7 }
 0x35d   : > { %839 = vmatprep.mubr.f32.mxu1 %v1386_v0 }
 0x360   : > { %1250 = vmatmul.mubr.msk.f32.gmra.mxu1 %vm334_vm1, %v1511_v8 }
 0x361   : > { %845 = vmatprep.mubr.f32.mxu1 %v1386_v0 }
 0x364   : > { %1251 = vmatmul.mubr.msk.f32.gmra.mxu1 %vm334_vm1, %v1519_v9 }
 0x365   : > { %851 = vmatprep.mubr.f32.mxu1 %v1386_v0 }
 0x368   : > { %1252 = vmatmul.mubr.msk.f32.gmra.mxu1 %vm334_vm1, %v1527_v10  ;;  %v874_v6 = vpop.xlane.xlu1 %873 }
 0x369   : > { %857 = vmatprep.mubr.f32.mxu1 %v1386_v0  ;;  %v875_v7 = vmul.f32 0.00390625, %v874_v6 }
 0x36b   : > { %v876_v63 = vadd.f32 1e-05, %v875_v7 }
 0x36c   : > { %1253 = vmatmul.mubr.msk.f32.gmra.mxu1 %vm334_vm1, %v1535_v11  ;;  %v587_v50 = vpop.permute.xlu1 %586 }
 0x36d   : > { %1320 = vrsqrt.f32 %v876_v63 }
 0x37a   : > { %v1321_v9 = vpop.eup %1320 }
 0x37b   : > { %v1657_v18 = vmul.f32 %v1321_v9, %v1595_v14  ;;  %v1660_v11 = vmul.f32 %v1321_v9, %v1597_v15 }
 0x410   : > { %v658_v8 = vpop.f32.mrf.mxu1 }
 0x411   : > { %v659_v54 = vadd.f32 %v658_v8, %v587_v50 }
 0x412   : > { %v660_v1 = vpop.f32.mrf.mxu1 }
 0x413   : > { %v661_v55 = vadd.f32 %v660_v1, %v587_v50 }
 0x414   : > { %v743_v2 = vpop.f32.mrf.mxu1 }
 0x416   : > { %v745_v12 = vpop.f32.mrf.mxu1 }
 0x418   : > { %v829_v13 = vpop.f32.mrf.mxu1 }
 0x419   : > { %v830_v16 = vadd.f32 %v829_v13, %v1558_v31 }
 0x41a   : > { %v831_v17 = vpop.f32.mrf.mxu1 }
 0x41b   : > { %v832_v10 = vadd.f32 %v831_v17, %v1558_v31  ;;  %v880_v21 = vmul.f32 %v1657_v18, %v830_v16 }
 0x41c   : > { %v835_v19 = vpop.f32.mrf.mxu1 }
 0x41d   : > { %v836_v20 = vadd.f32 %v835_v19, %v1560_v34  ;;  %v881_v23 = vmul.f32 %v1660_v11, %v832_v10 }
 0x41e   : > { %v837_v22 = vpop.f32.mrf.mxu1 }
 0x41f   : > { %v838_v24 = vadd.f32 %v837_v22, %v1560_v34  ;;  %v882_v25 = vadd.f32 %v880_v21, %v836_v20 }
 0x420   : > { %v841_v42 = vpop.f32.mrf.mxu1 }
 0x421   : > { %v883_v26 = vadd.f32 %v881_v23, %v838_v24  ;;  %v884_v31 = vmax.f32 %v882_v25, 0.0  ;;  %v842_v7 = vadd.f32 %v841_v42, %v1608_v35 }
 0x422   : > { %v843_v43 = vpop.f32.mrf.mxu1 }
 0x423   : > { %v885_v27 = vmax.f32 %v883_v26, 0.0  ;;  %v844_v8 = vadd.f32 %v843_v43, %v1608_v35 }
 0x425   : > { %916 = vmatprep.subr.mxu0 %v885_v27 }
 0x426   : > { %917 = vmatpush1.msra.mxu0 %v884_v31 }
 0x427   : > { %1254 = vmatmul.mubr.msk.f32.vlgmr.msra.gmra.mxu0 %vm487_vm2, %v1575_v48  ;;  %v328_v48 = vld [vmem:[%s1754_s5 + $0x10] sm:$0xff] }
 0x428   : > { %1043 = vmatprep.mubr.f32.mxu0 %v1386_v0 }
 0x4e7   : > { %v952_v14 = vpop.f32.mrf.mxu0 }
 0x4e8   : > { %v953_v28 = vadd.f32 %v952_v14, %v1582_v53 }
 0x4e9   : > { %v954_v15 = vpop.f32.mrf.mxu0 }
 0x4ea   : > { %v955_v29 = vadd.f32 %v954_v15, %v1582_v53  ;;  %v847_v53 = vpop.f32.mrf.mxu1 }
 0x4eb   : > { %v848_v13 = vadd.f32 %v847_v53, %v1589_v3 }
 0x4ec   : > { %v957_v30 = vadd.f32 %v955_v29, %v953_v28  ;;  %v849_v44 = vpop.f32.mrf.mxu1 }
 0x4ed   : > { %v850_v16 = vadd.f32 %v849_v44, %v1589_v3 }
 0x4ee   : > { %958 = vadd.xlane.f32.xlu0 %v957_v30  ;;  %v853_v49 = vpop.f32.mrf.mxu1 }
 0x4ef   : > { %v854_v63 = vadd.f32 %v853_v49, %v1591_v4 }
 0x4f0   : > { %v855_v51 = vpop.f32.mrf.mxu1 }
 0x4f1   : > { %v856_v61 = vadd.f32 %v855_v51, %v1591_v4  ;;  %v1050_v20 = vmul.f32 %v1657_v18, %v854_v63 }
 0x4f2   : > { %v859_v60 = vpop.f32.mrf.mxu1 }
 0x4f3   : > { %v860_v9 = vadd.f32 %v859_v60, %v1593_v5  ;;  %v1051_v17 = vmul.f32 %v1660_v11, %v856_v61 }
 0x4f4   : > { %v861_v38 = vpop.f32.mrf.mxu1 }
 0x4f5   : > { %v862_v1 = vadd.f32 %v861_v38, %v1593_v5  ;;  %v1052_v35 = vadd.f32 %v1050_v20, %v860_v9 }
 0x4f7   : > { %v1053_v21 = vadd.f32 %v1051_v17, %v862_v1  ;;  %v1054_v26 = vmax.f32 %v1052_v35, 0.0 }
 0x4f9   : > { %v1055_v25 = vmax.f32 %v1053_v21, 0.0 }
 0x577   : > { %v959_v34 = vpop.xlane.xlu0 %958 }
 0x578   : > { %v960_v32 = vmul.f32 0.00390625, %v959_v34 }
 0x57a   : > { %v961_v33 = vsub.f32 %v953_v28, %v960_v32  ;;  %v962_v36 = vsub.f32 %v955_v29, %v960_v32 }
 0x57c   : > { %v963_v39 = vmul.f32 %v961_v33, %v961_v33  ;;  %v964_v40 = vmul.f32 %v962_v36, %v962_v36 }
 0x57e   : > { %v965_v41 = vadd.f32 %v964_v40, %v963_v39 }
 0x580   : > { %966 = vadd.xlane.f32.xlu0 %v965_v41 }
 0x596   : > { %671 = vperm.xlu0 %1313, %v328_v48  }
 0x609   : > { %v967_v45 = vpop.xlane.xlu0 %966 }
 0x60a   : > { %v968_v46 = vmul.f32 0.00390625, %v967_v45 }
 0x60c   : > { %v969_v47 = vadd.f32 1e-05, %v968_v46 }
 0x60e   : > { %1322 = vrsqrt.f32 %v969_v47 }
 0x611   : > { %v672_v52 = vpop.permute.xlu0 %671 }
 0x612   : > { %v744_v37 = vadd.f32 %v743_v2, %v672_v52  ;;  %v746_v56 = vadd.f32 %v745_v12, %v672_v52 }
 0x614   : > { %v748_v57 = vadd.f32 %v744_v37, %v659_v54  ;;  %v749_v58 = vadd.f32 %v746_v56, %v661_v55 }
 0x616   : > { %750 = vst [vmem:[%s1677_s13] sm:$0xff] %v748_v57  ;;  %751 = vst [vmem:[%s1677_s13 + $0x8] sm:$0xff] %v749_v58 }
 0x61b   : > { %v1323_v6 = vpop.eup %1322 }
 0x61c   : > { %v972_v2 = vmul.f32 %v1323_v6, %v962_v36  ;;  %v971_v12 = vmul.f32 %v1323_v6, %v961_v33 }
 0x61e   : > { %v974_v10 = vmul.f32 %v972_v2, %v844_v8  ;;  %v973_v19 = vmul.f32 %v971_v12, %v842_v7 }
 0x620   : > { %v976_v4 = vadd.f32 %v974_v10, %v850_v16  ;;  %v975_v22 = vadd.f32 %v973_v19, %v848_v13 }
 0x622   : > { %v978_v23 = vmax.f32 %v976_v4, 0.0  ;;  %v977_v24 = vmax.f32 %v975_v22, 0.0 }
 0x624   : > { %1009 = vmatprep.subr.mxu0 %v978_v23 }
 0x625   : > { %1010 = vmatpush1.msra.mxu0 %v977_v24 }
 0x626   : > { %1255 = vmatmul.mubr.msk.f32.vlgmr.msra.gmra.mxu0 %vm487_vm2, %v1622_v59  ;;  %1086 = vmatprep.subr.mxu0 %v1055_v25 }
 0x627   : > { %1087 = vmatpush1.msra.mxu0 %v1054_v26  ;;  %1120 = vmatprep.mubr.f32.mxu0 %v1386_v0 }
 0x62a   : > { %1256 = vmatmul.mubr.msk.f32.vlgmr.msra.gmra.mxu0 %vm487_vm2, %v1630_v62 }
 0x6e6   : > { %v1045_v3 = vpop.f32.mrf.mxu0 }
 0x6e7   : > { %v1046_v11 = vadd.f32 %v1045_v3, %v587_v50 }
 0x6e8   : > { %v1047_v5 = vpop.f32.mrf.mxu0 }
 0x6e9   : > { %v1048_v59 = vadd.f32 %v1047_v5, %v587_v50 }
 0x6ea   : > { %v1122_v18 = vpop.f32.mrf.mxu0 }
 0x6eb   : > { %v1123_v27 = vadd.f32 %v1122_v18, %v672_v52 }
 0x6ec   : > { %v1124_v31 = vpop.f32.mrf.mxu0 }
 0x6ed   : > { %v1127_v14 = vadd.f32 %v1123_v27, %v1046_v11  ;;  %v1125_v15 = vadd.f32 %v1124_v31, %v672_v52 }
 0x6ef   : > { %1257 = vst [vmem:[%s1677_s13 + $0x10] sm:$0xff] %v1127_v14  ;;  %v1128_v0 = vadd.f32 %v1125_v15, %v1048_v59 }
 0x6f1   : > { %1258 = vst [vmem:[%s1677_s13 + $0x18] sm:$0xff] %v1128_v0 }
 0x6f2   : > { %1337 = shalt.err (!%p1334_p3)
}
 0x6f3   : > { %s1338_s29 = scalar_lea.hbm %s1701_s19, 512  ;;  %s1342_s11 = scalar_lea.hbm %s1755_s6, 1024 }
 0x6f4   : > { %p1339_p4 = scmp.ne.s32.totalorder %s1701_s19, %s1338_s29  ;;  %p1343_p9 = scmp.lt.s32.totalorder %s1701_s19, %s1755_s6 }
 0x6f5   : > { %p1344_p10 = scmp.lt.s32.totalorder %s1342_s11, %s1338_s29 }
 0x6f6   : > { %p1340_p7 = pnand %p1339_p4, %p1464_p5 }
 0x6f7   : > { %p1345_p11 = por %p1344_p10, %p1343_p9 }
 0x6f8   : > { %p1341_p8 = pneg %p1340_p7 }
 0x6fa   : > { %p1346_p12 = pnand %p1345_p11, %p1341_p8 }
 0x6fc   : > { %1349 = shalt.err (!%p1346_p12)
}
 0x6fd   : > { %s1389_s15 = smov 256   ;;  %s1390_s14 = smov 16  }
 0x6fe   : > { %1269 = dma.vmem_to_hbm [thread:$0]  (%p1464_p5), %s1703_s16, 512, %s1701_s19, %s1709_s25, %s1389_s15, %s1389_s15, %s1390_s14  }
 0x6ff PF: > { %p1275_p13 = scmp.ge.s32.totalorder %s1384_s24, 2  ;;  %s1162_s18 = sand.u32 1, %s1372_s21  }
 0x700   : > { %s1163_s20 = scalar_lea.sflag [#allocation3], %s1162_s18 }
 0x701   : > { %p1272_p0 = pnand %p1275_p13, %p1468_p6 }
 0x703   : > { %p1273_p1 = pneg %p1272_p0 }
 0x705   : > { %1367 = dma.done.wait (%p1273_p1), %s1163_s20, 512  }
 0x706   : > { %1369 = vsyncadd (%p1273_p1), %s1163_s20, 4294966784  ;;  %p16_p2 = scmp.ge.s32.totalorder %s1451_s27, 4   ;;  %s1758_s21 = smov %s1376_s22 }
 0x707   : > { %s1759_s22 = smov %s1380_s23  ;;  %s1760_s23 = smov %s1462_s30 }
 0x708   : > { %s1761_s24 = smov %s1451_s27  ;;  %18 = sbr.rel (!%p16_p2) target bundleno = 3 (0x3), region = 85 }
 0x70d   :  { %1168 = vsyncpa [#allocation3], 1 }
 0x70e   :  { %1170 = vsyncpa [#allocation3 + $0x1], 1 }

</bundles_post_ra>
